<compile_context>
chip_gen: v7x
topology: tpu7x:2x2x1
jax: 0.10.0
libtpu: 0.0.40
codegen_flags: <defaults>
</compile_context>

<pallas_src>
import functools

import jax
import jax.numpy as jnp
from jax.experimental import pallas as pl
from jax.experimental.pallas import tpu as pltpu

BN_EPS = 1e-5
NEG_SLOPE = 0.2
# Rows fed to each per-step node matmul in the GAT stack (G * N).
# 128 fills the v5e MXU; use 256 on v6e/v7x when the batch allows.
TARGET_ROWS_PER_STEP = 128


# ---------------------------------------------------------------------------
# Kernel A: fc_node, tiled over rows, + BatchNorm batch statistics
# (sum / sum-of-squares accumulated across grid steps -> "arbitrary" axis).
# ---------------------------------------------------------------------------
def node_fc_stats_kernel(x_ref, wT_ref, b_ref, y_ref, sum_ref, sq_ref):
    y = jnp.dot(x_ref[...], wT_ref[...], preferred_element_type=jnp.float32) + b_ref[...]
    y_ref[...] = y

    @pl.when(pl.program_id(0) == 0)
    def _():
        sum_ref[...] = jnp.zeros_like(sum_ref)
        sq_ref[...] = jnp.zeros_like(sq_ref)

    sum_ref[...] += jnp.sum(y, axis=0, keepdims=True)
    sq_ref[...] += jnp.sum(y * y, axis=0, keepdims=True)


# ---------------------------------------------------------------------------
# Kernel B: BN-apply + the full stack of GatConv layers, G graphs per grid step.
# Edge-row layout inside a graph: row i*N + j  ==  edge (source j -> target i).
# ---------------------------------------------------------------------------
def gat_stack_kernel(y_ref, e_ref, scale_ref, shift_ref,
                     wnode_ref, bnode_ref, wedge_ref, bedge_ref, o_ref,
                     *, n_graphs, n_nodes, n_layers, neg_slope):
    g, n = n_graphs, n_nodes
    h = o_ref.shape[-1]
    ein = e_ref.shape[-1]

    # BatchNorm1d (training-mode batch stats) folded to a single FMA.
    x = y_ref[...].reshape(g * n, h) * scale_ref[...] + shift_ref[...]      # f32
    e_bf = e_ref[...].reshape(g * n * n, ein)                               # bf16; read once, reused L times

    for l in range(n_layers):                                               # static unroll over layers
        # One MXU-dense matmul == [fc(x) | attn_i(fc(x)) | attn_j(fc(x))] (biases folded).
        cmb = jnp.dot(x.astype(jnp.bfloat16), wnode_ref[l],
                      preferred_element_type=jnp.float32) + bnode_ref[l]    # (g*n, 3h)
        xp = cmb[:, :h]                                                     # (g*n, h)
        ai = cmb[:, h:2 * h].reshape(g, n, 1, h)                            # target-node term
        aj = cmb[:, 2 * h:].reshape(g, 1, n, h)                             # source-node term

        # fc_edge folded into the attention edge weight: straight from raw edge_attr.
        ae = (jnp.dot(e_bf, wedge_ref[l], preferred_element_type=jnp.float32)
              + bedge_ref[l]).reshape(g, n, n, h)                           # (g, tgt, src, h)

        # alpha[b, i, j, :] = attn([x_i ; x_j ; e_ij])  (split concat-linear)
        alpha = ai + aj + ae
        alpha = jnp.where(alpha > 0, alpha, neg_slope * alpha)              # leaky_relu(0.2)

        # segment softmax over incoming edges j (per target node i, per channel)
        m = jnp.max(alpha, axis=2, keepdims=True)
        p = jnp.exp(alpha - m)
        denom = jnp.sum(p, axis=2, keepdims=True)
        p = p * pl.reciprocal(denom, approx=True)                           # EUP reciprocal slot

        # 'add' aggregation of messages x_j * alpha (dropout p=0 -> identity), f32
        x = jnp.sum(p * xp.reshape(g, 1, n, h), axis=2).reshape(g * n, h)

    o_ref[...] = x.reshape(g, n, h)


# ---------------------------------------------------------------------------
# Wrapper
# ---------------------------------------------------------------------------
def encoder_forward(params, node_x, edge_attr):
    """node_x: (B, N, Din); edge_attr: (B, N, N, Ein) with [b, i, j] = edge j -> i."""
    B, N, Din = node_x.shape
    Ein = edge_attr.shape[-1]
    H = params["w_node"].shape[0]
    L = params["w_fc"].shape[0]
    f32, bf16 = jnp.float32, jnp.bfloat16
    hp = jax.lax.Precision.HIGHEST

    # ---- fold / pre-transpose parameters once at trace time --------------------
    wnT = params["w_node"].T.astype(f32)                            # (Din, H)
    bnd = params["b_node"].reshape(1, H).astype(f32)
    weT = params["w_edge"].T.astype(f32)                            # (Ein, He)
    be = params["b_edge"].reshape(1, -1).astype(f32)                # (1, He)
    gamma = params["bn_gamma"].reshape(1, H).astype(f32)
    beta = params["bn_beta"].reshape(1, H).astype(f32)

    wfcT = jnp.transpose(params["w_fc"], (0, 2, 1)).astype(f32)     # (L, H, H)
    bfc = params["b_fc"].reshape(L, 1, H).astype(f32)
    wa = params["w_attn"].astype(f32)                               # (L, H, 2H+He)
    waiT = jnp.transpose(wa[:, :, :H], (0, 2, 1))                   # (L, H, H)
    wajT = jnp.transpose(wa[:, :, H:2 * H], (0, 2, 1))              # (L, H, H)
    waeT = jnp.transpose(wa[:, :, 2 * H:], (0, 2, 1))               # (L, He, H)
    ba = params["b_attn"].reshape(L, 1, H).astype(f32)

    # Node side: x @ [Wfc^T | Wfc^T Wai^T | Wfc^T Waj^T] == [xp | ai | aj] in ONE matmul.
    wnode = jnp.concatenate(
        [wfcT,
         jnp.einsum("lij,ljk->lik", wfcT, waiT, precision=hp),
         jnp.einsum("lij,ljk->lik", wfcT, wajT, precision=hp)], axis=-1)     # (L, H, 3H)
    bnode = jnp.concatenate(
        [bfc,
         jnp.einsum("lij,ljk->lik", bfc, waiT, precision=hp),
         jnp.einsum("lij,ljk->lik", bfc, wajT, precision=hp)], axis=-1)      # (L, 1, 3H)
    # Edge side: fc_edge folded into the per-layer attention edge weight:
    #   eh @ Wae^T == edge_attr @ (We^T Wae^T) + be Wae^T
    wedge = jnp.einsum("ij,ljk->lik", weT, waeT, precision=hp)               # (L, Ein, H)
    bedge = jnp.einsum("ij,ljk->lik", be, waeT, precision=hp) + ba           # (L, 1, H)

    # ---- kernel A: fc_node (row-tiled) + BN batch statistics -------------------
    rows = B * N
    tm = rows
    for cand in (1024, 512, 256, 128):
        if rows % cand == 0 and rows // cand >= 2:
            tm = cand
            break
    x_flat = node_x.reshape(rows, Din).astype(f32)
    y, bn_sum, bn_sq = pl.pallas_call(
        node_fc_stats_kernel,
        out_shape=(jax.ShapeDtypeStruct((rows, H), f32),
                   jax.ShapeDtypeStruct((1, H), f32),
                   jax.ShapeDtypeStruct((1, H), f32)),
        grid_spec=pltpu.PrefetchScalarGridSpec(
            num_scalar_prefetch=0,
            grid=(rows // tm,),
            in_specs=[
                pl.BlockSpec((tm, Din), lambda i: (i, 0)),
                pl.BlockSpec((Din, H), lambda i: (0, 0)),
                pl.BlockSpec((1, H), lambda i: (0, 0)),
            ],
            out_specs=[
                pl.BlockSpec((tm, H), lambda i: (i, 0)),
                pl.BlockSpec((1, H), lambda i: (0, 0)),     # accumulated across steps
                pl.BlockSpec((1, H), lambda i: (0, 0)),     # accumulated across steps
            ]),
        compiler_params=pltpu.CompilerParams(dimension_semantics=("arbitrary",)),
    )(x_flat, wnT, bnd)

    # BN affine folded to a single scale/shift (tiny (1, H) math, plain XLA glue).
    cnt = jnp.asarray(rows, f32)
    mu = bn_sum / cnt
    var = jnp.maximum(bn_sq / cnt - mu * mu, 0.0)          # biased var (PyTorch training-mode BN)
    bn_scale = gamma * jax.lax.rsqrt(var + BN_EPS)
    bn_shift = beta - mu * bn_scale

    # ---- kernel B: BN-apply + all GatConv layers fused, G graphs per grid step -
    G = B
    for cand in range(1, B + 1):
        if B % cand == 0 and cand * N >= TARGET_ROWS_PER_STEP:
            G = cand
            break

    e_flat = edge_attr.reshape(B, N * N, Ein).astype(bf16)   # raw edges: read ONCE per graph
    kernel = functools.partial(gat_stack_kernel, n_graphs=G, n_nodes=N,
                               n_layers=L, neg_slope=NEG_SLOPE)
    winv = dict(pipeline_mode=pl.Buffered(1))                # grid-invariant: single buffer
    out = pl.pallas_call(
        kernel,
        out_shape=jax.ShapeDtypeStruct((B, N, H), f32),
        grid_spec=pltpu.PrefetchScalarGridSpec(
            num_scalar_prefetch=0,
            grid=(B // G,),
            in_specs=[
                pl.BlockSpec((G, N, H), lambda g: (g, 0, 0)),          # fc_node output (these graphs)
                pl.BlockSpec((G, N * N, Ein), lambda g: (g, 0, 0)),    # raw edge_attr (these graphs)
                pl.BlockSpec((1, H), lambda g: (0, 0), **winv),        # BN scale
                pl.BlockSpec((1, H), lambda g: (0, 0), **winv),        # BN shift
                pl.BlockSpec((L, H, 3 * H), lambda g: (0, 0, 0), **winv),   # merged node weights
                pl.BlockSpec((L, 1, 3 * H), lambda g: (0, 0, 0), **winv),   # merged node biases
                pl.BlockSpec((L, Ein, H), lambda g: (0, 0, 0), **winv),     # folded edge weights
                pl.BlockSpec((L, 1, H), lambda g: (0, 0, 0), **winv),       # folded edge biases
            ],
            out_specs=pl.BlockSpec((G, N, H), lambda g: (g, 0, 0)),
        ),
        compiler_params=pltpu.CompilerParams(dimension_semantics=("parallel",)),
    )(y.reshape(B, N, H), e_flat, bn_scale, bn_shift,
      wnode.astype(bf16), bnode, wedge.astype(bf16), bedge)

    return out


# ---------------------------------------------------------------------------
# Pure-JAX f32 reference (mirrors the PyTorch math for the dense complete graph)
# ---------------------------------------------------------------------------
def encoder_reference(params, node_x, edge_attr):
    B, N, Din = node_x.shape
    H = params["w_node"].shape[0]
    L = params["w_fc"].shape[0]
    hp = jax.lax.Precision.HIGHEST

    x = jnp.dot(node_x.reshape(B * N, Din), params["w_node"].T, precision=hp) + params["b_node"]
    mu = jnp.mean(x, axis=0)
    var = jnp.mean((x - mu) ** 2, axis=0)
    x = (x - mu) / jnp.sqrt(var + BN_EPS) * params["bn_gamma"] + params["bn_beta"]

    eh = jnp.dot(edge_attr, params["w_edge"].T, precision=hp) + params["b_edge"]   # (B,N,N,He)
    x = x.reshape(B, N, H)
    for l in range(L):
        wfc, bfc = params["w_fc"][l], params["b_fc"][l]
        wa, ba = params["w_attn"][l], params["b_attn"][l]
        xp = jnp.dot(x, wfc.T, precision=hp) + bfc                                  # (B,N,H)
        wai, waj, wae = wa[:, :H], wa[:, H:2 * H], wa[:, 2 * H:]
        alpha = (jnp.dot(xp, wai.T, precision=hp)[:, :, None, :]
                 + jnp.dot(xp, waj.T, precision=hp)[:, None, :, :]
                 + jnp.dot(eh, wae.T, precision=hp)
                 + ba)
        alpha = jnp.where(alpha > 0, alpha, NEG_SLOPE * alpha)
        alpha = jax.nn.softmax(alpha, axis=2)            # softmax over source nodes j
        x = jnp.sum(alpha * xp[:, None, :, :], axis=2)   # 'add' aggregation
    return x


if __name__ == "__main__":
    # Small but MXU/lane-friendly sizes (egate uses hidden_node_dim = 128).
    B, N = 16, 16         # 16 complete graphs, 16 nodes each -> G=8 graphs/step, grid=(2,)
    DIN, EIN = 8, 8       # raw node / edge feature dims
    H, HE = 128, 64       # hidden node / edge dims
    L = 3                 # conv_layers

    key = jax.random.PRNGKey(0)
    ks = jax.random.split(key, 12)
    s = 0.1
    params = {
        "w_node": jax.random.normal(ks[0], (H, DIN), jnp.float32) * s,
        "b_node": jax.random.normal(ks[1], (H,), jnp.float32) * s,
        "w_edge": jax.random.normal(ks[2], (HE, EIN), jnp.float32) * s,
        "b_edge": jax.random.normal(ks[3], (HE,), jnp.float32) * s,
        "bn_gamma": 1.0 + jax.random.normal(ks[4], (H,), jnp.float32) * s,
        "bn_beta": jax.random.normal(ks[5], (H,), jnp.float32) * s,
        "w_fc": jax.random.normal(ks[6], (L, H, H), jnp.float32) * s,
        "b_fc": jax.random.normal(ks[7], (L, H), jnp.float32) * s,
        "w_attn": jax.random.normal(ks[8], (L, H, 2 * H + HE), jnp.float32) * s,
        "b_attn": jax.random.normal(ks[9], (L, H), jnp.float32) * s,
    }
    node_x = jax.random.normal(ks[10], (B, N, DIN), jnp.float32)
    edge_attr = jax.random.normal(ks[11], (B, N, N, EIN), jnp.float32)

    out = encoder_forward(params, node_x, edge_attr)
    out = jax.block_until_ready(out)

    ref = encoder_reference(params, node_x, edge_attr)
    assert out.shape == (B, N, H)
    max_abs = float(jnp.max(jnp.abs(out - ref)))
    rel_fro = float(jnp.linalg.norm(out - ref) / jnp.linalg.norm(ref))
    # Tolerance accounts for deliberate bf16 MXU operands (f32 accumulate), the folded
    # weight products, and the approximate EUP reciprocal; structural bugs give rel ~ 1.
    assert max_abs < 2e-1 and rel_fro < 1e-1, (
        f"mismatch vs f32 reference: max_abs={max_abs:.4f}, rel_fro={rel_fro:.4f}")
    print("KERNEL_OK")
</pallas_src>

<mosaic_0001>
module attributes {stable_mosaic.version = 11 : i64} {
  func.func @node_fc_stats_kernel(%arg0: i32, %arg1: memref<128x8xf32, #tpu.memory_space<vmem>>, %arg2: memref<8x128xf32, #tpu.memory_space<vmem>>, %arg3: memref<1x128xf32, #tpu.memory_space<vmem>>, %arg4: memref<128x128xf32, #tpu.memory_space<vmem>>, %arg5: memref<1x128xf32, #tpu.memory_space<vmem>>, %arg6: memref<1x128xf32, #tpu.memory_space<vmem>>) attributes {dimension_semantics = [#tpu.dimension_semantics<arbitrary>], iteration_bounds = array<i64: 2>, scalar_prefetch = 0 : i64, scratch_operands = 0 : i64, tpu.core_type = #tpu.core_type<tc>, window_params = [{transform_indices = @transform_0, window_bounds = array<i64: 128, 8>}, {pipeline_mode = #tpu.pipeline_mode<synchronous>, transform_indices = @transform_1, window_bounds = array<i64: 8, 128>}, {pipeline_mode = #tpu.pipeline_mode<synchronous>, transform_indices = @transform_2, window_bounds = array<i64: 1, 128>}, {transform_indices = @transform_3, window_bounds = array<i64: 128, 128>}, {pipeline_mode = #tpu.pipeline_mode<synchronous>, transform_indices = @transform_4, window_bounds = array<i64: 1, 128>}, {pipeline_mode = #tpu.pipeline_mode<synchronous>, transform_indices = @transform_5, window_bounds = array<i64: 1, 128>}]} {
    %c0 = arith.constant 0 : index
    %c0_0 = arith.constant 0 : index
    %0 = vector.load %arg1[%c0, %c0_0] : memref<128x8xf32, #tpu.memory_space<vmem>>, vector<128x8xf32>
    %c0_1 = arith.constant 0 : index
    %c0_2 = arith.constant 0 : index
    %1 = vector.load %arg2[%c0_1, %c0_2] : memref<8x128xf32, #tpu.memory_space<vmem>>, vector<8x128xf32>
    %cst = arith.constant dense<0.000000e+00> : vector<128x128xf32>
    %2 = tpu.matmul %0, %1, %cst {dimension_numbers = #tpu.dot_dimension_numbers<[1], [0], [0], [1], [0, 0, 1, 1], [], []>} : vector<128x8xf32>, vector<8x128xf32>, vector<128x128xf32> -> vector<128x128xf32>
    %c0_3 = arith.constant 0 : index
    %c0_4 = arith.constant 0 : index
    %3 = vector.load %arg3[%c0_3, %c0_4] : memref<1x128xf32, #tpu.memory_space<vmem>>, vector<1x128xf32>
    %4 = vector.broadcast %3 : vector<1x128xf32> to vector<128x128xf32>
    %5 = arith.addf %2, %4 : vector<128x128xf32>
    %c0_5 = arith.constant 0 : index
    %c0_6 = arith.constant 0 : index
    %6 = vector.load %arg4[%c0_5, %c0_6] : memref<128x128xf32, #tpu.memory_space<vmem>>, vector<128x128xf32>
    tpu.vector_store %arg4[%c0_5, %c0_6], %5 {strides = array<i32>} : memref<128x128xf32, #tpu.memory_space<vmem>>, vector<128x128xf32>,
    %c0_i32 = arith.constant 0 : i32
    %7 = arith.cmpi eq, %arg0, %c0_i32 : i32
    %8 = arith.extui %7 : i1 to i32
    %c0_i32_7 = arith.constant 0 : i32
    %9 = arith.cmpi ne, %8, %c0_i32_7 : i32
    scf.if %9 {
      %cst_18 = arith.constant 0.000000e+00 : f32
      %21 = vector.broadcast %cst_18 : f32 to vector<1x128xf32>
      %c0_19 = arith.constant 0 : index
      %c0_20 = arith.constant 0 : index
      %22 = vector.load %arg5[%c0_19, %c0_20] : memref<1x128xf32, #tpu.memory_space<vmem>>, vector<1x128xf32>
      tpu.vector_store %arg5[%c0_19, %c0_20], %21 {strides = array<i32>} : memref<1x128xf32, #tpu.memory_space<vmem>>, vector<1x128xf32>,
      %cst_21 = arith.constant 0.000000e+00 : f32
      %23 = vector.broadcast %cst_21 : f32 to vector<1x128xf32>
      %c0_22 = arith.constant 0 : index
      %c0_23 = arith.constant 0 : index
      %24 = vector.load %arg6[%c0_22, %c0_23] : memref<1x128xf32, #tpu.memory_space<vmem>>, vector<1x128xf32>
      tpu.vector_store %arg6[%c0_22, %c0_23], %23 {strides = array<i32>} : memref<1x128xf32, #tpu.memory_space<vmem>>, vector<1x128xf32>,
    } else {
    }
    %c0_8 = arith.constant 0 : index
    %c0_9 = arith.constant 0 : index
    %10 = vector.load %arg5[%c0_8, %c0_9] : memref<1x128xf32, #tpu.memory_space<vmem>>, vector<1x128xf32>
    %cst_10 = arith.constant dense<0.000000e+00> : vector<128xf32>
    %11 = vector.multi_reduction <add>, %5, %cst_10 [0] : vector<128x128xf32> to vector<128xf32>
    %12 = vector.shape_cast %11 : vector<128xf32> to vector<1x128xf32>
    %13 = arith.addf %10, %12 : vector<1x128xf32>
    %c0_11 = arith.constant 0 : index
    %c0_12 = arith.constant 0 : index
    %14 = vector.load %arg5[%c0_11, %c0_12] : memref<1x128xf32, #tpu.memory_space<vmem>>, vector<1x128xf32>
    tpu.vector_store %arg5[%c0_11, %c0_12], %13 {strides = array<i32>} : memref<1x128xf32, #tpu.memory_space<vmem>>, vector<1x128xf32>,
    %c0_13 = arith.constant 0 : index
    %c0_14 = arith.constant 0 : index
    %15 = vector.load %arg6[%c0_13, %c0_14] : memref<1x128xf32, #tpu.memory_space<vmem>>, vector<1x128xf32>
    %16 = arith.mulf %5, %5 : vector<128x128xf32>
    %cst_15 = arith.constant dense<0.000000e+00> : vector<128xf32>
    %17 = vector.multi_reduction <add>, %16, %cst_15 [0] : vector<128x128xf32> to vector<128xf32>
    %18 = vector.shape_cast %17 : vector<128xf32> to vector<1x128xf32>
    %19 = arith.addf %15, %18 : vector<1x128xf32>
    %c0_16 = arith.constant 0 : index
    %c0_17 = arith.constant 0 : index
    %20 = vector.load %arg6[%c0_16, %c0_17] : memref<1x128xf32, #tpu.memory_space<vmem>>, vector<1x128xf32>
    tpu.vector_store %arg6[%c0_16, %c0_17], %19 {strides = array<i32>} : memref<1x128xf32, #tpu.memory_space<vmem>>, vector<1x128xf32>,
    return
  }
  func.func @transform_0(%arg0: i32) -> (i32, i32) {
    %c0_i32 = arith.constant 0 : i32
    %c0_i32_0 = arith.constant 0 : i32
    return %arg0, %c0_i32 : i32, i32
  }
  func.func @transform_1(%arg0: i32) -> (i32, i32) {
    %c0_i32 = arith.constant 0 : i32
    %c0_i32_0 = arith.constant 0 : i32
    %c0_i32_1 = arith.constant 0 : i32
    return %c0_i32, %c0_i32_0 : i32, i32
  }
  func.func @transform_2(%arg0: i32) -> (i32, i32) {
    %c0_i32 = arith.constant 0 : i32
    %c0_i32_0 = arith.constant 0 : i32
    %c0_i32_1 = arith.constant 0 : i32
    return %c0_i32, %c0_i32_0 : i32, i32
  }
  func.func @transform_3(%arg0: i32) -> (i32, i32) {
    %c0_i32 = arith.constant 0 : i32
    %c0_i32_0 = arith.constant 0 : i32
    return %arg0, %c0_i32 : i32, i32
  }
  func.func @transform_4(%arg0: i32) -> (i32, i32) {
    %c0_i32 = arith.constant 0 : i32
    %c0_i32_0 = arith.constant 0 : i32
    %c0_i32_1 = arith.constant 0 : i32
    return %c0_i32, %c0_i32_0 : i32, i32
  }
  func.func @transform_5(%arg0: i32) -> (i32, i32) {
    %c0_i32 = arith.constant 0 : i32
    %c0_i32_0 = arith.constant 0 : i32
    %c0_i32_1 = arith.constant 0 : i32
    return %c0_i32, %c0_i32_0 : i32, i32
  }
}

</mosaic_0001>

<bundles_post_ra>
// kernel: tpu_custom_call.1
= control target key start
LH: loop header
LB: loop body
LE: loop exit
PB: predicated region body
PF: predicated region fallthrough
CT: control target
= control target key end

     0   :  { %11 = vsyncpa [#allocation3], 0  ;;  %s1187_s0 = inlined_call_operand.vmem [shape: f32[256,8], index: 0, kind: input, shape index: {}]   ;;  %s1188_s1 = inlined_call_operand.vmem [shape: f32[8,128], index: 1, kind: input, shape index: {}]   ;;  %s1189_s2 = inlined_call_operand.vmem [shape: f32[1,128], index: 2, kind: input, shape index: {}]   ;;  %s1190_s3 = inlined_call_operand.hbm [shape: f32[256,128], index: 3, kind: output, shape index: {0}]   ;;  %s1191_s4 = inlined_call_operand.hbm [shape: f32[1,128], index: 4, kind: output, shape index: {1}]   ;;  %s1192_s5 = inlined_call_operand.hbm [shape: f32[1,128], index: 5, kind: output, shape index: {2}]  }
   0x1   :  { %13 = vsyncpa [#allocation3 + $0x1], 0 }
   0x2   :  { %14 = vsyncpa [#allocation5], 0  ;;  %s937_s18 = smov 0   ;;  %s939_s19 = smov 0  }
   0x3   :  { %s941_s20 = smov 0   ;;  %s943_s21 = smov 0  }
   0x4 LB: > { %s958_s22 = sadd.s32 4294967295, %s899_s21   ;;  %s645_s23 = sadd.s32 4294967294, %s899_s21   ;;  %s899_s21 = sphi %s943_s21, %s1198_s21   ;;  %s895_s20 = sphi %s941_s20, %s1197_s20   ;;  %s891_s19 = sphi %s939_s19, %s1196_s19   ;;  %s887_s18 = sphi %s937_s18, %s1195_s18  }
   0x5   : > { %s962_s24 = sadd.s32 1, %s899_s21   ;;  %s95_s25 = sadd.s32 1, %s895_s20 }
   0x6   : > { %s92_s26 = ssub.s32 %s899_s21, %s962_s24  ;;  %p105_p0 = scmp.ne.s32.totalorder %s895_s20, %s891_s19 }
   0x7   : > { %p93_p1 = scmp.eq.s32.totalorder %s92_s26, 0  ;;  %p106_p2 = scmp.eq.s32.totalorder %s958_s22, 1 }
   0x8   : > { %p111_p3 = scmp.ne.s32.totalorder %s891_s19, %s887_s18  ;;  %p112_p4 = scmp.eq.s32.totalorder %s645_s23, 1 }
   0x9   : > { %s973_s27 = scalar_select %p93_p1, %s895_s20, %s95_s25  }
   0xa   : > { %p977_p5 = por %p106_p2, %p105_p0  ;;  %p981_p6 = por %p112_p4, %p111_p3 }
   0xb   : > { %p648_p7 = scmp.ge.s32.totalorder %s899_s21, 1  ;;  %p187_p8 = scmp.lt.s32.totalorder %s899_s21, 3 }
   0xd   : > { %p188_p9 = pnand %p648_p7, %p187_p8 }
   0xe   : > { %v238_v0 = vld [vmem:[%s1188_s1] sm:$0xff] (!%p188_p9)  ;;  %s650_s7 = sshll.u32 (!%p188_p9), %s958_s22, 4  ;;  %vm246_vm0 = vcmask (!%p188_p9), 64512   ;;  %s208_s12 = sand.u32 (!%p188_p9), 1, %s891_s19  }
   0xf   : > { %191 = sbr.rel (%p188_p9) target bundleno = 351 (0x15f), region = 32  ;;  %697 = vmatprep.subr.mxu0 (!%p188_p9), %v238_v0  ;;  %723 = vmatprep.subr.mxu1 (!%p188_p9), %v238_v0  ;;  %p216_p10 = scmp.lt.s32.totalorder (!%p188_p9), %s650_s7, 31  ;;  %v652_v17 = vld [vmem:[%s1189_s2] ss:$0 sm:$0xff] (!%p188_p9) }
  0x10   : > { %698 = vmatpush3.msra.mxu0 (!%p188_p9), %v238_v0  ;;  %724 = vmatpush3.msra.mxu1 (!%p188_p9), %v238_v0  ;;  %s649_s13 = sshll.u32 (!%p188_p9), %s208_s12, 7  ;;  %p669_p11 = scmp.ne.s32.totalorder (!%p188_p9), %s958_s22, 0 }
  0x11   : > { %s1020_s16 = scalar_lea.vmem (!%p188_p9), [#allocation2], %s649_s13 }
  0x16   : > { %s1200_s7 = smov (!%p216_p10, %s650_s7), 31  ;;  %v901_v50 = vmov (!%p669_p11), 0.0  }
  0x17   : > { %s651_s8 = sshll.u32 %s1200_s7, 3  ;;  %460 = vst [vmem:[#allocation4] sm:$0x1] (!%p669_p11), %v901_v50  ;;  %461 = vst [vmem:[#allocation6] sm:$0x1] (!%p669_p11), %v901_v50 }
  0x18   : > { %s219_s11 = scalar_lea.vmem %s1187_s0, %s651_s8 }
  0x19   : > { %v222_v1 = vld [vmem:[%s219_s11] sm:$0xff]  ;;  %v223_v3 = vld [vmem:[%s219_s11 + $0x8] sm:$0xff]  ;;  %v224_v5 = vld [vmem:[%s219_s11 + $0x10] sm:$0xff] }
  0x1a   : > { %v230_v2 = vld [vmem:[%s219_s11 + $0x40] sm:$0xff]  ;;  %699 = vmatprep.mubr.msk.f32.mxu0 %vm246_vm0, %v222_v1  ;;  %v231_v4 = vld [vmem:[%s219_s11 + $0x48] sm:$0xff]  ;;  %v232_v6 = vld [vmem:[%s219_s11 + $0x50] sm:$0xff] }
  0x1b   : > { %711 = vmatprep.mubr.msk.f32.mxu1 %vm246_vm0, %v230_v2  ;;  %700 = vmatmul.mubr.msk.f32.vlgmr.msra.gmra.mrb[0].mxu0 %vm246_vm0, %v223_v3  ;;  %v225_v7 = vld [vmem:[%s219_s11 + $0x18] sm:$0xff]  ;;  %v226_v9 = vld [vmem:[%s219_s11 + $0x20] sm:$0xff]  ;;  %v227_v11 = vld [vmem:[%s219_s11 + $0x28] sm:$0xff] }
  0x1c   : > { %712 = vmatmul.mubr.msk.f32.vlgmr.msra.gmra.mrb[0].mxu1 %vm246_vm0, %v231_v4  ;;  %702 = vmatprep.mubr.msk.f32.mxu0 %vm246_vm0, %v224_v5  ;;  %v233_v8 = vld [vmem:[%s219_s11 + $0x58] sm:$0xff]  ;;  %v234_v10 = vld [vmem:[%s219_s11 + $0x60] sm:$0xff]  ;;  %v235_v12 = vld [vmem:[%s219_s11 + $0x68] sm:$0xff] }
  0x1d   : > { %714 = vmatprep.mubr.msk.f32.mxu1 %vm246_vm0, %v232_v6  ;;  %v228_v13 = vld [vmem:[%s219_s11 + $0x30] sm:$0xff]  ;;  %v229_v15 = vld [vmem:[%s219_s11 + $0x38] sm:$0xff] }
  0x1e   : > { %v236_v14 = vld [vmem:[%s219_s11 + $0x70] sm:$0xff]  ;;  %v237_v16 = vld [vmem:[%s219_s11 + $0x78] sm:$0xff] }
  0x1f   : > { %703 = vmatmul.mubr.msk.f32.gmra.mrb[2].mxu0 %vm246_vm0, %v225_v7 }
  0x20   : > { %715 = vmatmul.mubr.msk.f32.gmra.mrb[2].mxu1 %vm246_vm0, %v233_v8  ;;  %705 = vmatprep.mubr.msk.f32.mxu0 %vm246_vm0, %v226_v9 }
  0x21   : > { %717 = vmatprep.mubr.msk.f32.mxu1 %vm246_vm0, %v234_v10 }
  0x23   : > { %706 = vmatmul.mubr.msk.f32.gmra.mrb[4].mxu0 %vm246_vm0, %v227_v11 }
  0x24   : > { %718 = vmatmul.mubr.msk.f32.gmra.mrb[4].mxu1 %vm246_vm0, %v235_v12  ;;  %708 = vmatprep.mubr.msk.f32.mxu0 %vm246_vm0, %v228_v13 }
  0x25   : > { %720 = vmatprep.mubr.msk.f32.mxu1 %vm246_vm0, %v236_v14 }
  0x27   : > { %709 = vmatmul.mubr.msk.f32.gmra.mrb[6].mxu0 %vm246_vm0, %v229_v15 }
  0x28   : > { %721 = vmatmul.mubr.msk.f32.gmra.mrb[6].mxu1 %vm246_vm0, %v237_v16 }
  0xee   : > { %v701_v18 = vpop.f32.mrb[0].mxu0 }
  0xef   : > { %v713_v19 = vpop.f32.mrb[0].mxu1  ;;  %v367_v20 = vadd.f32 %v701_v18, %v652_v17  ;;  %v361_v22 = vpop.f32.mrb[1].mxu0 }
  0xf0   : > { %v1016_v21 = vadd.f32 %v713_v19, %v652_v17  ;;  %v401_v23 = vpop.f32.mrb[1].mxu1  ;;  %v362_v24 = vadd.f32 %v652_v17, %v361_v22 }
  0xf1   : > { %v1018_v25 = vadd.f32 %v652_v17, %v401_v23  ;;  %441 = vst [vmem:[%s1020_s16 + $0x8] sm:$0xff] %v367_v20 }
  0xf2   : > { %449 = vst [vmem:[%s1020_s16 + $0x48] sm:$0xff] %v1016_v21  ;;  %440 = vst [vmem:[%s1020_s16] sm:$0xff] %v362_v24  ;;  %v704_v26 = vpop.f32.mrb[2].mxu0 }
  0xf3   : > { %448 = vst [vmem:[%s1020_s16 + $0x40] sm:$0xff] %v1018_v25  ;;  %v716_v27 = vpop.f32.mrb[2].mxu1  ;;  %v377_v28 = vadd.f32 %v704_v26, %v652_v17  ;;  %v371_v30 = vpop.f32.mrb[3].mxu0 }
  0xf4   : > { %v1028_v29 = vadd.f32 %v716_v27, %v652_v17  ;;  %v411_v31 = vpop.f32.mrb[3].mxu1  ;;  %v372_v32 = vadd.f32 %v652_v17, %v371_v30 }
  0xf5   : > { %v1030_v33 = vadd.f32 %v652_v17, %v411_v31  ;;  %443 = vst [vmem:[%s1020_s16 + $0x18] sm:$0xff] %v377_v28 }
  0xf6   : > { %451 = vst [vmem:[%s1020_s16 + $0x58] sm:$0xff] %v1028_v29  ;;  %442 = vst [vmem:[%s1020_s16 + $0x10] sm:$0xff] %v372_v32  ;;  %v707_v34 = vpop.f32.mrb[4].mxu0 }
  0xf7   : > { %450 = vst [vmem:[%s1020_s16 + $0x50] sm:$0xff] %v1030_v33  ;;  %v719_v35 = vpop.f32.mrb[4].mxu1  ;;  %v1038_v36 = vadd.f32 %v707_v34, %v652_v17  ;;  %v381_v38 = vpop.f32.mrb[5].mxu0 }
  0xf8   : > { %v1040_v37 = vadd.f32 %v719_v35, %v652_v17  ;;  %v421_v39 = vpop.f32.mrb[5].mxu1  ;;  %v382_v40 = vadd.f32 %v652_v17, %v381_v38 }
  0xf9   : > { %v1042_v41 = vadd.f32 %v652_v17, %v421_v39  ;;  %445 = vst [vmem:[%s1020_s16 + $0x28] sm:$0xff] %v1038_v36  ;;  %459 = sbr.rel (%p669_p11) target bundleno = 256 (0x100), region = 36 }
  0xfa   : > { %453 = vst [vmem:[%s1020_s16 + $0x68] sm:$0xff] %v1040_v37  ;;  %444 = vst [vmem:[%s1020_s16 + $0x20] sm:$0xff] %v382_v40  ;;  %v710_v42 = vpop.f32.mrb[6].mxu0 }
  0xfb   : > { %452 = vst [vmem:[%s1020_s16 + $0x60] sm:$0xff] %v1042_v41  ;;  %v722_v43 = vpop.f32.mrb[6].mxu1  ;;  %v1051_v44 = vadd.f32 %v710_v42, %v652_v17  ;;  %v391_v46 = vpop.f32.mrb[7].mxu0 }
  0xfc   : > { %v1053_v45 = vadd.f32 %v722_v43, %v652_v17  ;;  %v431_v47 = vpop.f32.mrb[7].mxu1  ;;  %v392_v48 = vadd.f32 %v652_v17, %v391_v46 }
  0xfd   : > { %v1055_v49 = vadd.f32 %v652_v17, %v431_v47  ;;  %447 = vst [vmem:[%s1020_s16 + $0x38] sm:$0xff] %v1051_v44 }
  0xfe   : > { %455 = vst [vmem:[%s1020_s16 + $0x78] sm:$0xff] %v1053_v45  ;;  %446 = vst [vmem:[%s1020_s16 + $0x30] sm:$0xff] %v392_v48 }
  0xff   : > { %454 = vst [vmem:[%s1020_s16 + $0x70] sm:$0xff] %v1055_v49 }
 0x100 PF: > { %v463_v51 = vadd.f32 %v367_v20, %v362_v24  ;;  %v487_v52 = vmul.f32 %v362_v24, %v362_v24  ;;  %v488_v53 = vmul.f32 %v367_v20, %v367_v20  ;;  %v489_v55 = vmul.f32 %v372_v32, %v372_v32  ;;  %s679_s17 = sshll.u32 %s958_s22, 11  ;;  %s540_s30 = sshll.u32 %s1020_s16, 4  ;;  %s1072_s30 = int_to_ptr.vmem [resolvable:$true] %s540_s30 }
 0x101   : > { %s1069_s26 = scalar_lea.hbm %s1190_s3, %s679_s17  ;;  %v490_v57 = vmul.f32 %v377_v28, %v377_v28  ;;  %v491_v60 = vmul.f32 %v382_v40, %v382_v40  ;;  %s1076_s6 = scalar_lea.sflag [#allocation3], %s208_s12 }
 0x102   : > { %v464_v54 = vadd.f32 %v463_v51, %v372_v32  ;;  %v503_v58 = vadd.f32 %v488_v53, %v487_v52  ;;  %s781_s7 = scalar_lea.vmem %s1072_s30, 2048  ;;  %s902_s8 = smov [#allocation2]  }
 0x103   : > { %p782_p12 = scmp.ne.s32.totalorder %s1072_s30, %s781_s7  ;;  %s785_s9 = sshll.u32 %s902_s8, 4  ;;  %s786_s9 = int_to_ptr.vmem [resolvable:$false] %s785_s9 }
 0x104   : > { %v465_v56 = vadd.f32 %v464_v54, %v377_v28  ;;  %v504_v61 = vadd.f32 %v503_v58, %v489_v55  ;;  %s787_s10 = scalar_lea.vmem %s786_s9, 4096  ;;  %p788_p1 = scmp.lt.s32.totalorder %s1072_s30, %s786_s9 }
 0x105   : > { %p783_p13 = pnand %p782_p12, %p977_p5  ;;  %p789_p3 = scmp.lt.s32.totalorder %s787_s10, %s781_s7 }
 0x106   : > { %v466_v59 = vadd.f32 %v465_v56, %v382_v40 }
 0x107   : > { %p784_p0 = pneg %p783_p13  ;;  %p790_p4 = por %p789_p3, %p788_p1 }
 0x109   : > { %p791_p7 = pnand %p790_p4, %p784_p0 }
 0x10b   : > { %794 = shalt.err (!%p791_p7)
}
 0x10c   : > { %s795_s11 = scalar_lea.hbm %s1069_s26, 2048  ;;  %s799_s14 = scalar_lea.hbm %s1190_s3, 4096 }
 0x10d   : > { %p796_p8 = scmp.ne.s32.totalorder %s1069_s26, %s795_s11  ;;  %p800_p11 = scmp.lt.u32.totalorder %s1069_s26, %s1190_s3 }
 0x10e   : > { %p801_p12 = scmp.lt.u32.totalorder %s799_s14, %s795_s11  ;;  %p803_p0 = scmp.lt.u32.totalorder %s795_s11, %s1069_s26 }
 0x10f   : > { %p797_p9 = pnand %p796_p8, %p977_p5 }
 0x110   : > { %p802_p13 = por %p801_p12, %p800_p11 }
 0x111   : > { %p798_p10 = pneg %p797_p9 }
 0x112   : > { %p804_p1 = por %p803_p0, %p802_p13 }
 0x114   : > { %p805_p3 = pnand %p804_p1, %p798_p10 }
 0x116   : > { %808 = shalt.err (!%p805_p3)
}
 0x117   : > { %s903_s17 = smov 128   ;;  %s904_s23 = smov 8   ;;  %v467_v62 = vadd.f32 %v466_v59, %v1038_v36  ;;  %v492_v63 = vmul.f32 %v1038_v36, %v1038_v36  ;;  %v505_v0 = vadd.f32 %v504_v61, %v490_v57  ;;  %v493_v2 = vmul.f32 %v392_v48, %v392_v48 }
 0x118   : > { %725 = dma.vmem_to_hbm [thread:$0]  (%p977_p5), %s1072_s30, 2048, %s1069_s26, %s1076_s6, %s903_s17, %s903_s17, %s904_s23   ;;  %v494_v5 = vmul.f32 %v1051_v44, %v1051_v44  ;;  %v495_v8 = vmul.f32 %v1018_v25, %v1018_v25  ;;  %v496_v11 = vmul.f32 %v1016_v21, %v1016_v21  ;;  %v497_v14 = vmul.f32 %v1030_v33, %v1030_v33 }
 0x119   : > { %v468_v1 = vadd.f32 %v467_v62, %v392_v48  ;;  %v506_v3 = vadd.f32 %v505_v0, %v491_v60  ;;  %v498_v17 = vmul.f32 %v1028_v29, %v1028_v29  ;;  %v499_v20 = vmul.f32 %v1042_v41, %v1042_v41  ;;  %s905_s28 = smov [#allocation4]   ;;  %s906_s26 = smov [#allocation6]  }
 0x11a   : > { %v500_v23 = vmul.f32 %v1040_v37, %v1040_v37  ;;  %v501_v26 = vmul.f32 %v1055_v49, %v1055_v49  ;;  %s554_s25 = sshll.u32 %s905_s28, 4  ;;  %s565_s30 = sshll.u32 %s906_s26, 4  ;;  %s555_s25 = int_to_ptr.vmem [resolvable:$true] %s554_s25  ;;  %s566_s30 = int_to_ptr.vmem [resolvable:$true] %s565_s30 }
 0x11b   : > { %v469_v4 = vadd.f32 %v468_v1, %v1051_v44  ;;  %v507_v6 = vadd.f32 %v506_v3, %v492_v63  ;;  %s809_s6 = scalar_lea.vmem %s555_s25, 16  ;;  %s815_s7 = scalar_lea.vmem %s555_s25, 32 }
 0x11c   : > { %p810_p5 = scmp.ne.s32.totalorder %s555_s25, %s809_s6  ;;  %p816_p8 = scmp.lt.s32.totalorder %s555_s25, %s555_s25 }
 0x11d   : > { %v470_v7 = vadd.f32 %v469_v4, %v1018_v25  ;;  %v508_v9 = vadd.f32 %v507_v6, %v493_v2  ;;  %p817_p9 = scmp.lt.s32.totalorder %s815_s7, %s809_s6 }
 0x11e   : > { %p811_p4 = pnand %p810_p5, %p106_p2 }
 0x11f   : > { %v471_v10 = vadd.f32 %v470_v7, %v1016_v21  ;;  %v509_v12 = vadd.f32 %v508_v9, %v494_v5  ;;  %p818_p10 = por %p817_p9, %p816_p8 }
 0x120   : > { %p812_p7 = pneg %p811_p4 }
 0x121   : > { %v472_v13 = vadd.f32 %v471_v10, %v1030_v33  ;;  %v510_v15 = vadd.f32 %v509_v12, %v495_v8 }
 0x122   : > { %p819_p11 = pnand %p818_p10, %p812_p7 }
 0x123   : > { %v473_v16 = vadd.f32 %v472_v13, %v1028_v29  ;;  %v511_v18 = vadd.f32 %v510_v15, %v496_v11  ;;  %v502_v29 = vmul.f32 %v1053_v45, %v1053_v45 }
 0x125   : > { %v474_v19 = vadd.f32 %v473_v16, %v1042_v41  ;;  %v512_v22 = vadd.f32 %v511_v18, %v497_v14  ;;  %v462_v41 = vld [vmem:[#allocation4] sm:$0x1] }
 0x127   : > { %v475_v21 = vadd.f32 %v474_v19, %v1040_v37  ;;  %v513_v24 = vadd.f32 %v512_v22, %v498_v17 }
 0x129   : > { %v476_v25 = vadd.f32 %v475_v21, %v1055_v49  ;;  %v514_v27 = vadd.f32 %v513_v24, %v499_v20 }
 0x12b   : > { %v477_v28 = vadd.f32 %v476_v25, %v1053_v45  ;;  %v515_v30 = vadd.f32 %v514_v27, %v500_v23  ;;  %v486_v45 = vld [vmem:[#allocation6] sm:$0x1] }
 0x12d   : > { %v478_v31 = vrot.slane %v477_v28, 4  ;;  %v516_v32 = vadd.f32 %v515_v30, %v501_v26 }
 0x12f   : > { %v479_v33 = vadd.f32 %v478_v31, %v477_v28  ;;  %v517_v34 = vadd.f32 %v516_v32, %v502_v29 }
 0x131   : > { %v480_v35 = vrot.slane %v479_v33, 2  ;;  %v518_v36 = vrot.slane %v517_v34, 4 }
 0x133   : > { %v481_v37 = vadd.f32 %v480_v35, %v479_v33  ;;  %v519_v38 = vadd.f32 %v518_v36, %v517_v34 }
 0x135   : > { %v482_v39 = vrot.slane %v481_v37, 1  ;;  %v520_v40 = vrot.slane %v519_v38, 2 }
 0x137   : > { %v483_v42 = vadd.f32 %v482_v39, %v481_v37  ;;  %v521_v43 = vadd.f32 %v520_v40, %v519_v38 }
 0x139   : > { %v484_v44 = vadd.f32 %v483_v42, %v462_v41  ;;  %v522_v46 = vrot.slane %v521_v43, 1 }
 0x13b   : > { %485 = vst [vmem:[#allocation4] sm:$0x1] %v484_v44  ;;  %v523_v47 = vadd.f32 %v522_v46, %v521_v43 }
 0x13c   : > { %822 = shalt.err (!%p819_p11)
}
 0x13d   : > { %s823_s10 = scalar_lea.hbm %s1191_s4, 16 }
 0x13e   : > { %p824_p12 = scmp.ne.s32.totalorder %s1191_s4, %s823_s10  ;;  %p829_p1 = scmp.lt.u32.totalorder %s823_s10, %s1191_s4 }
 0x140   : > { %p825_p13 = pnand %p824_p12, %p106_p2 }
 0x142   : > { %p826_p0 = pneg %p825_p13 }
 0x144   : > { %p831_p3 = pnand %p829_p1, %p826_p0 }
 0x146   : > { %834 = shalt.err (!%p831_p3)
}
 0x147   : > { %727 = dma.vmem_to_hbm [thread:$0]  (%p106_p2), %s555_s25, 16, %s1191_s4, [#allocation5]   ;;  %v524_v48 = vadd.f32 %v523_v47, %v486_v45 }
 0x148   : > { %s835_s17 = scalar_lea.vmem %s566_s30, 16  ;;  %s841_s23 = scalar_lea.vmem %s566_s30, 32 }
 0x149   : > { %525 = vst [vmem:[#allocation6] sm:$0x1] %v524_v48  ;;  %p836_p5 = scmp.ne.s32.totalorder %s566_s30, %s835_s17  ;;  %p842_p8 = scmp.lt.s32.totalorder %s566_s30, %s566_s30 }
 0x14a   : > { %p843_p9 = scmp.lt.s32.totalorder %s841_s23, %s835_s17 }
 0x14b   : > { %p837_p4 = pnand %p836_p5, %p106_p2 }
 0x14c   : > { %p844_p10 = por %p843_p9, %p842_p8 }
 0x14d   : > { %p838_p7 = pneg %p837_p4 }
 0x14f   : > { %p845_p11 = pnand %p844_p10, %p838_p7 }
 0x151   : > { %848 = shalt.err (!%p845_p11)
}
 0x152   : > { %s849_s6 = scalar_lea.hbm %s1192_s5, 16 }
 0x153   : > { %p850_p12 = scmp.ne.s32.totalorder %s1192_s5, %s849_s6  ;;  %p855_p1 = scmp.lt.u32.totalorder %s849_s6, %s1192_s5 }
 0x155   : > { %p851_p13 = pnand %p850_p12, %p106_p2 }
 0x157   : > { %p852_p0 = pneg %p851_p13 }
 0x159   : > { %p857_p3 = pnand %p855_p1, %p852_p0 }
 0x15b   : > { %860 = shalt.err (!%p857_p3)
}
 0x15c   : > { %729 = dma.vmem_to_hbm [thread:$0]  (%p106_p2), %s566_s30, 16, %s1192_s5, [#allocation5]  }
 0x15d   : > { %878 = dma.done.wait (%p106_p2), [#allocation5], 32  }
 0x15e   : > { %880 = vsyncadd (%p106_p2), [#allocation5], 4294967264 }
 0x15f PF: > { %p743_p5 = scmp.ge.s32.totalorder %s899_s21, 2  ;;  %s585_s12 = sand.u32 1, %s887_s18  }
 0x160   : > { %s586_s13 = scalar_lea.sflag [#allocation3], %s585_s12 }
 0x161   : > { %p736_p4 = pnand %p743_p5, %p981_p6 }
 0x163   : > { %882 = dma.done.wait (!%p736_p4), %s586_s13, 2048  }
 0x164   : > { %884 = vsyncadd (!%p736_p4), %s586_s13, 4294965248  ;;  %p17_p7 = scmp.ge.s32.totalorder %s962_s24, 4   ;;  %s1195_s18 = smov %s891_s19 }
 0x165   : > { %s1196_s19 = smov %s895_s20  ;;  %s1197_s20 = smov %s973_s27 }
 0x166   : > { %s1198_s21 = smov %s962_s24  ;;  %19 = sbr.rel (!%p17_p7) target bundleno = 4 (0x4), region = 87 }
 0x16d   :  { %591 = vsyncpa [#allocation3], 1 }
 0x16e   :  { %593 = vsyncpa [#allocation3 + $0x1], 1 }
 0x16f   :  { %594 = vsyncpa [#allocation5], 1 }

</bundles_post_ra>
